<compile_context>
chip_gen: v7x
topology: tpu7x:2x2x1
jax: 0.10.0
libtpu: 0.0.40
codegen_flags: <defaults>
</compile_context>

<pallas_src>
import jax
import jax.numpy as jnp
from jax import lax
from jax.experimental import pallas as pl
from jax.experimental.pallas import tpu as pltpu

EPS = 1e-5  # BatchNorm2d default eps


# ---------------------------------------------------------------------------
# Pallas kernel: one fused matmul (all 4 convs + w_gamma/w_beta combine) plus
# the BatchNorm normalize and the final elementwise combine, per M tile.
# ---------------------------------------------------------------------------
def sean_kernel(w_ref,    # (2*Cxp, Kp)   pre-scaled, stacked conv weights (resident)
                bn_ref,   # (Cxp, 2)      per-channel [inv_std, -mean*inv_std] (resident)
                x_ref,    # (Cxp, tile_m) raw x slab tile (f32)
                col_ref,  # (Kp, tile_m)  folded im2col tile of [x ; upsampled y]
                out_ref): # (Cxp, tile_m)
    cxp = x_ref.shape[0]

    # One big MXU matmul: rows [0:Cxp) = gamma, rows [Cxp:2*Cxp) = beta.
    gb = jnp.dot(w_ref[...], col_ref[...], preferred_element_type=jnp.float32)
    gamma = gb[:cxp]
    beta = gb[cxp:]

    # BatchNorm normalize (stats precomputed outside): x_norm = x*inv_std - mean*inv_std
    bn = bn_ref[...]
    scale = bn[:, 0:1]   # (Cxp, 1)
    shift = bn[:, 1:2]   # (Cxp, 1)
    x_norm = x_ref[...] * scale + shift

    out_ref[...] = gamma * x_norm + beta


# ---------------------------------------------------------------------------
# Plain-JAX glue: upsample, layout conversion, im2col, weight folding.
# ---------------------------------------------------------------------------
def _round_up(a, b):
    return (a + b - 1) // b * b


def _nearest_upsample(y, H, W):
    """PyTorch F.interpolate(mode='nearest') semantics: idx = floor(i * in/out)."""
    _, _, Hy, Wy = y.shape
    ih = (jnp.arange(H) * Hy) // H
    iw = (jnp.arange(W) * Wy) // W
    return y[:, :, ih[:, None], iw[None, :]]


def _to_cm(a):
    """NCHW -> (C, N*H*W) channels-major slab."""
    N, C, H, W = a.shape
    return jnp.transpose(a, (1, 0, 2, 3)).reshape(C, N * H * W)


def _im2col(a_nchw):
    """Zero-pad by 1, extract the 9 shifted (C, N*H*W) slabs, fold taps into rows."""
    N, C, H, W = a_nchw.shape
    ap = jnp.pad(a_nchw, ((0, 0), (0, 0), (1, 1), (1, 1)))
    cols = []
    for dh in range(3):
        for dw in range(3):
            cols.append(_to_cm(ap[:, :, dh:dh + H, dw:dw + W]))   # (C, M)
    return jnp.concatenate(cols, axis=0)                          # (9*C, M), k-major


def _flat_w(w_oihw):
    """(Cout, Cin, 3, 3) -> (Cout, 9*Cin) matching the _im2col row ordering."""
    Cout, Cin, kh, kw = w_oihw.shape
    return jnp.transpose(w_oihw, (0, 2, 3, 1)).reshape(Cout, kh * kw * Cin)


def sean_forward(x, y, params, *, upsample="nearest", tile_m=1024,
                 compute_dtype=jnp.float32):
    """x: (N, Cx, H, W), y: (N, Cy, Hy, Wy)  ->  (N, Cx, H, W)  (NCHW, float32)."""
    assert upsample == "nearest"  # TODO(synk): bilinear upsample path not implemented
    assert tile_m % 128 == 0
    N, Cx, H, W = x.shape
    Cy = y.shape[1]
    M = N * H * W

    y_up = _nearest_upsample(y, H, W)

    # --- BatchNorm2d(affine=False), training-mode biased batch stats (two-pass) ---
    mean = jnp.mean(x, axis=(0, 2, 3))                                   # (Cx,)
    var = jnp.mean((x - mean[None, :, None, None]) ** 2, axis=(0, 2, 3))  # biased
    inv_std = lax.rsqrt(var + EPS)
    bn = jnp.stack([inv_std, -mean * inv_std], axis=1).astype(jnp.float32)  # (Cx, 2)

    # --- padded, channels-major layout --------------------------------------
    Cxp = _round_up(Cx, 8)               # sublane granule (f32 output path)
    K = 9 * (Cx + Cy)
    Kp = _round_up(K, 16)                # sublane granule for bf16 col slab too
    tile_m = min(tile_m, _round_up(M, 128))
    n_tiles = pl.cdiv(M, tile_m)
    Mp = n_tiles * tile_m

    x2d = jnp.pad(_to_cm(x), ((0, Cxp - Cx), (0, Mp - M)))               # (Cxp, Mp) f32

    col = jnp.concatenate([_im2col(x), _im2col(y_up)], axis=0)           # (K, M)
    col = jnp.pad(col, ((0, Kp - K), (0, Mp - M))).astype(compute_dtype)  # (Kp, Mp)

    # --- fold the 4 conv weights + (1-w)/w mixture into one weight matrix ----
    wg = params["w_gamma"].astype(jnp.float32)
    wb = params["w_beta"].astype(jnp.float32)
    w_gamma_row = jnp.concatenate([(1.0 - wg) * _flat_w(params["gamma_x"]),
                                   wg * _flat_w(params["gamma_y"])], axis=1)  # (Cx, K)
    w_beta_row = jnp.concatenate([(1.0 - wb) * _flat_w(params["beta_x"]),
                                  wb * _flat_w(params["beta_y"])], axis=1)    # (Cx, K)
    w_gamma_row = jnp.pad(w_gamma_row, ((0, Cxp - Cx), (0, Kp - K)))
    w_beta_row = jnp.pad(w_beta_row, ((0, Cxp - Cx), (0, Kp - K)))
    w_all = jnp.concatenate([w_gamma_row, w_beta_row], axis=0).astype(compute_dtype)

    bn_pad = jnp.pad(bn, ((0, Cxp - Cx), (0, 0)))                        # (Cxp, 2)

    # --- VMEM budget estimate (double-buffered tiles + resident weights) -----
    cbytes = jnp.dtype(compute_dtype).itemsize
    est = (2 * (Kp * tile_m * cbytes + Cxp * tile_m * 4)   # pipelined inputs
           + 2 * Cxp * tile_m * 4                          # pipelined output
           + 2 * Cxp * Kp * cbytes + Cxp * 2 * 4           # resident weights + bn
           + 2 * Cxp * tile_m * 4)                         # matmul result temp
    vmem_limit = int(min(max(4 * est, 32 * 1024 * 1024), 64 * 1024 * 1024))

    out_cm = pl.pallas_call(
        sean_kernel,
        out_shape=jax.ShapeDtypeStruct((Cxp, Mp), jnp.float32),
        grid_spec=pltpu.PrefetchScalarGridSpec(
            num_scalar_prefetch=0,
            grid=(n_tiles,),
            in_specs=[
                pl.BlockSpec((2 * Cxp, Kp), lambda i: (0, 0)),   # weights, resident
                pl.BlockSpec((Cxp, 2), lambda i: (0, 0)),        # bn table, resident
                pl.BlockSpec((Cxp, tile_m), lambda i: (0, i)),   # x slab tile
                pl.BlockSpec((Kp, tile_m), lambda i: (0, i)),    # folded col tile
            ],
            out_specs=pl.BlockSpec((Cxp, tile_m), lambda i: (0, i)),
        ),
        compiler_params=pltpu.CompilerParams(
            dimension_semantics=("parallel",),
            vmem_limit_bytes=vmem_limit,
        ),
    )(w_all, bn_pad, x2d, col)

    # strip padding, (Cx, N*H*W) -> (N, Cx, H, W)
    out = out_cm[:Cx, :M].reshape(Cx, N, H, W)
    return jnp.transpose(out, (1, 0, 2, 3))


# ---------------------------------------------------------------------------
# Pure-JAX reference (mirrors the PyTorch forward) for validation.
# ---------------------------------------------------------------------------
def sean_reference(x, y, params):
    N, Cx, H, W = x.shape
    y_up = _nearest_upsample(y, H, W)

    mean = jnp.mean(x, axis=(0, 2, 3), keepdims=True)
    var = jnp.mean((x - mean) ** 2, axis=(0, 2, 3), keepdims=True)  # biased
    x_norm = (x - mean) * lax.rsqrt(var + EPS)

    def conv(inp, w):
        return lax.conv_general_dilated(
            inp, w, window_strides=(1, 1), padding=[(1, 1), (1, 1)],
            dimension_numbers=("NCHW", "OIHW", "NCHW"))

    gamma_y = conv(y_up, params["gamma_y"])
    beta_y = conv(y_up, params["beta_y"])
    gamma_x = conv(x, params["gamma_x"])
    beta_x = conv(x, params["beta_x"])

    wg = params["w_gamma"]
    wb = params["w_beta"]
    gamma = (1.0 - wg) * gamma_x + wg * gamma_y
    beta = (1.0 - wb) * beta_x + wb * beta_y
    return gamma * x_norm + beta


if __name__ == "__main__":
    # Small shapes consistent with the module: N=2, x_ch=4, y_ch=8, x 16x16, y 8x8.
    N, x_ch, y_ch = 2, 4, 8
    H, W = 16, 16
    Hy, Wy = 8, 8

    key = jax.random.PRNGKey(0)
    kx, ky, k1, k2, k3, k4 = jax.random.split(key, 6)

    x = jax.random.normal(kx, (N, x_ch, H, W), dtype=jnp.float32)
    y = jax.random.normal(ky, (N, y_ch, Hy, Wy), dtype=jnp.float32)

    def make_params(w_gamma, w_beta):
        return {
            "gamma_y": 0.1 * jax.random.normal(k1, (x_ch, y_ch, 3, 3), dtype=jnp.float32),
            "beta_y": 0.1 * jax.random.normal(k2, (x_ch, y_ch, 3, 3), dtype=jnp.float32),
            "gamma_x": 0.1 * jax.random.normal(k3, (x_ch, x_ch, 3, 3), dtype=jnp.float32),
            "beta_x": 0.1 * jax.random.normal(k4, (x_ch, x_ch, 3, 3), dtype=jnp.float32),
            "w_gamma": jnp.float32(w_gamma),
            "w_beta": jnp.float32(w_beta),
        }

    # (1) f32, multi-tile grid (4 tiles of 128 lanes), module-default w_gamma=w_beta=1.
    p1 = make_params(1.0, 1.0)
    out = jax.block_until_ready(sean_forward(x, y, p1, tile_m=128))
    ref = jax.block_until_ready(sean_reference(x, y, p1))
    assert out.shape == (N, x_ch, H, W)
    assert jnp.allclose(out, ref, rtol=1e-4, atol=1e-4), (
        f"f32 max abs err {jnp.max(jnp.abs(out - ref))}")

    # (2) f32, different tiling + non-trivial mixture weights (exercises the folded
    #     (1-w)*x-branch / w*y-branch combine and tile-boundary correctness).
    p2 = make_params(0.3, 0.8)
    out2 = jax.block_until_ready(sean_forward(x, y, p2, tile_m=256))
    ref2 = jax.block_until_ready(sean_reference(x, y, p2))
    assert jnp.allclose(out2, ref2, rtol=1e-4, atol=1e-4), (
        f"f32/mix max abs err {jnp.max(jnp.abs(out2 - ref2))}")

    # (3) bf16 compute path for the col slab + weights (production v6e/v7x config),
    #     f32 accumulation; relaxed tolerance vs. the f32 reference.
    out3 = jax.block_until_ready(
        sean_forward(x, y, p1, compute_dtype=jnp.bfloat16))
    assert jnp.allclose(out3, ref, rtol=5e-2, atol=5e-2), (
        f"bf16 max abs err {jnp.max(jnp.abs(out3 - ref))}")

    print("KERNEL_OK")
</pallas_src>

<mosaic_0001>
module attributes {stable_mosaic.version = 11 : i64} {
  func.func @sean_kernel(%arg0: i32, %arg1: memref<16x112xf32, #tpu.memory_space<vmem>>, %arg2: memref<8x2xf32, #tpu.memory_space<vmem>>, %arg3: memref<8x128xf32, #tpu.memory_space<vmem>>, %arg4: memref<112x128xf32, #tpu.memory_space<vmem>>, %arg5: memref<8x128xf32, #tpu.memory_space<vmem>>) attributes {dimension_semantics = [#tpu.dimension_semantics<parallel>], iteration_bounds = array<i64: 4>, scalar_prefetch = 0 : i64, scratch_operands = 0 : i64, tpu.core_type = #tpu.core_type<tc>, window_params = [{pipeline_mode = #tpu.pipeline_mode<synchronous>, transform_indices = @transform_0, window_bounds = array<i64: 16, 112>}, {pipeline_mode = #tpu.pipeline_mode<synchronous>, transform_indices = @transform_1, window_bounds = array<i64: 8, 2>}, {transform_indices = @transform_2, window_bounds = array<i64: 8, 128>}, {transform_indices = @transform_3, window_bounds = array<i64: 112, 128>}, {transform_indices = @transform_4, window_bounds = array<i64: 8, 128>}]} {
    %c0 = arith.constant 0 : index
    %c0_0 = arith.constant 0 : index
    %0 = vector.load %arg1[%c0, %c0_0] : memref<16x112xf32, #tpu.memory_space<vmem>>, vector<16x112xf32>
    %c0_1 = arith.constant 0 : index
    %c0_2 = arith.constant 0 : index
    %1 = vector.load %arg4[%c0_1, %c0_2] : memref<112x128xf32, #tpu.memory_space<vmem>>, vector<112x128xf32>
    %cst = arith.constant dense<0.000000e+00> : vector<16x128xf32>
    %2 = tpu.matmul %0, %1, %cst {dimension_numbers = #tpu.dot_dimension_numbers<[1], [0], [0], [1], [0, 0, 1, 1], [], []>} : vector<16x112xf32>, vector<112x128xf32>, vector<16x128xf32> -> vector<16x128xf32>
    %3 = vector.extract_strided_slice %2 {offsets = [0, 0], sizes = [8, 128], strides = [1, 1]} : vector<16x128xf32> to vector<8x128xf32>
    %4 = vector.extract_strided_slice %2 {offsets = [8, 0], sizes = [8, 128], strides = [1, 1]} : vector<16x128xf32> to vector<8x128xf32>
    %c0_3 = arith.constant 0 : index
    %c0_4 = arith.constant 0 : index
    %5 = vector.load %arg2[%c0_3, %c0_4] : memref<8x2xf32, #tpu.memory_space<vmem>>, vector<8x2xf32>
    %6 = vector.extract_strided_slice %5 {offsets = [0, 0], sizes = [8, 1], strides = [1, 1]} : vector<8x2xf32> to vector<8x1xf32>
    %7 = vector.extract_strided_slice %5 {offsets = [0, 1], sizes = [8, 1], strides = [1, 1]} : vector<8x2xf32> to vector<8x1xf32>
    %c0_5 = arith.constant 0 : index
    %c0_6 = arith.constant 0 : index
    %8 = vector.load %arg3[%c0_5, %c0_6] : memref<8x128xf32, #tpu.memory_space<vmem>>, vector<8x128xf32>
    %9 = vector.broadcast %6 : vector<8x1xf32> to vector<8x128xf32>
    %10 = arith.mulf %8, %9 : vector<8x128xf32>
    %11 = vector.broadcast %7 : vector<8x1xf32> to vector<8x128xf32>
    %12 = arith.addf %10, %11 : vector<8x128xf32>
    %13 = arith.mulf %3, %12 : vector<8x128xf32>
    %14 = arith.addf %13, %4 : vector<8x128xf32>
    %c0_7 = arith.constant 0 : index
    %c0_8 = arith.constant 0 : index
    %15 = vector.load %arg5[%c0_7, %c0_8] : memref<8x128xf32, #tpu.memory_space<vmem>>, vector<8x128xf32>
    tpu.vector_store %arg5[%c0_7, %c0_8], %14 {strides = array<i32>} : memref<8x128xf32, #tpu.memory_space<vmem>>, vector<8x128xf32>,
    return
  }
  func.func @transform_0(%arg0: i32) -> (i32, i32) {
    %c0_i32 = arith.constant 0 : i32
    %c0_i32_0 = arith.constant 0 : i32
    %c0_i32_1 = arith.constant 0 : i32
    return %c0_i32, %c0_i32_0 : i32, i32
  }
  func.func @transform_1(%arg0: i32) -> (i32, i32) {
    %c0_i32 = arith.constant 0 : i32
    %c0_i32_0 = arith.constant 0 : i32
    %c0_i32_1 = arith.constant 0 : i32
    return %c0_i32, %c0_i32_0 : i32, i32
  }
  func.func @transform_2(%arg0: i32) -> (i32, i32) {
    %c0_i32 = arith.constant 0 : i32
    %c0_i32_0 = arith.constant 0 : i32
    return %c0_i32, %arg0 : i32, i32
  }
  func.func @transform_3(%arg0: i32) -> (i32, i32) {
    %c0_i32 = arith.constant 0 : i32
    %c0_i32_0 = arith.constant 0 : i32
    return %c0_i32, %arg0 : i32, i32
  }
  func.func @transform_4(%arg0: i32) -> (i32, i32) {
    %c0_i32 = arith.constant 0 : i32
    %c0_i32_0 = arith.constant 0 : i32
    return %c0_i32, %arg0 : i32, i32
  }
}

</mosaic_0001>

<bundles_post_ra>
// kernel: tpu_custom_call.1
= control target key start
LH: loop header
LB: loop body
LE: loop exit
PB: predicated region body
PF: predicated region fallthrough
CT: control target
= control target key end

     0   :  { %s1120_s0 = inlined_call_operand.hbm [shape: f32[16,112], index: 0, kind: input, shape index: {}]   ;;  %s1121_s1 = inlined_call_operand.vmem [shape: f32[8,2], index: 1, kind: input, shape index: {}]   ;;  %s1122_s2 = inlined_call_operand.hbm [shape: f32[8,512], index: 2, kind: input, shape index: {}]   ;;  %s1123_s3 = inlined_call_operand.hbm [shape: f32[112,512], index: 3, kind: input, shape index: {}]   ;;  %s1124_s4 = inlined_call_operand.hbm [shape: f32[8,512], index: 4, kind: output, shape index: {}]  }
   0x1   :  { %1129 = sst [smem:[#allocation12_spill]] %s1122_s2 }
   0x2   :  { %9 = vsyncpa [#allocation3], 0 }
   0x3   :  { %10 = vsyncpa [#allocation6], 0 }
   0x4   :  { %12 = vsyncpa [#allocation6 + $0x1], 0 }
   0x5   :  { %13 = vsyncpa [#allocation4], 0 }
   0x6   :  { %15 = vsyncpa [#allocation4 + $0x1], 0  ;;  %s851_s15 = smov 0   ;;  %s853_s16 = smov 0  }
   0x7   :  { %s855_s17 = smov 0   ;;  %s857_s18 = smov 0  }
   0x8 LB: > { %s872_s19 = sadd.s32 1, %s815_s18   ;;  %s70_s20 = sadd.s32 1, %s811_s17  ;;  %s815_s18 = sphi %s857_s18, %s1146_s18   ;;  %s811_s17 = sphi %s855_s17, %s1145_s17   ;;  %s807_s16 = sphi %s853_s16, %s1144_s16   ;;  %s803_s15 = sphi %s851_s15, %s1143_s15  }
   0x9   : > { %s67_s21 = ssub.s32 %s815_s18, %s872_s19  ;;  %p77_p0 = scmp.ne.s32.totalorder %s811_s17, %s807_s16 }
   0xa   : > { %p68_p1 = scmp.eq.s32.totalorder %s67_s21, 0  ;;  %p78_p2 = scmp.eq.s32.totalorder %s815_s18, 0 }
   0xb   : > { %p614_p3 = scmp.lt.s32.totalorder %s815_s18, 4  ;;  %s175_s23 = sand.u32 1, %s815_s18  }
   0xc   : > { %s882_s22 = scalar_select %p68_p1, %s811_s17, %s70_s20  }
   0xd   : > { %p79_p4 = por %p78_p2, %p77_p0  ;;  %s177_s24 = sand.u32 1, %s811_s17  }
   0xe   : > { %s498_s25 = sshll.u32 %s177_s24, 3  ;;  %s499_s26 = sshll.u32 %s815_s18, 7 }
   0xf   : > { %s1130_s2 = sld [smem:[#allocation12_spill]]  ;;  %s179_s30 = scalar_lea.vmem [#allocation5], %s498_s25 }
  0x10   : > { %s186_s5 = sshll.u32 %s179_s30, 4  ;;  %p897_p5 = pnand %p614_p3, %p79_p4  ;;  %s901_s5 = int_to_ptr.vmem [resolvable:$true] %s186_s5 }
  0x11   : > { %s903_s7 = smul.u32 112, %s177_s24  ;;  %s905_s8 = scalar_lea.sflag [#allocation6], %s175_s23 }
  0x12   : > { %p659_p7 = pneg %p897_p5 }
  0x15   : > { %s895_s29 = scalar_lea.hbm %s1130_s2, %s499_s26  ;;  %s662_s12 = scalar_lea.hbm %s1130_s2, 512 }
  0x16   : > { %s657_s9 = scalar_lea.hbm %s895_s29, 128  ;;  %p663_p10 = scmp.lt.u32.totalorder %s895_s29, %s1130_s2 }
  0x17   : > { %p658_p6 = scmp.ne.s32.totalorder %s895_s29, %s657_s9  ;;  %p664_p11 = scmp.lt.u32.totalorder %s662_s12, %s657_s9 }
  0x18   : > { %p666_p13 = scmp.lt.u32.totalorder %s657_s9, %s895_s29 }
  0x19   : > { %p660_p8 = pnand %p659_p7, %p658_p6  ;;  %p665_p12 = por %p664_p11, %p663_p10 }
  0x1b   : > { %p661_p9 = pneg %p660_p8  ;;  %p667_p1 = por %p666_p13, %p665_p12 }
  0x1d   : > { %p668_p2 = pnand %p667_p1, %p661_p9 }
  0x1f   : > { %671 = shalt.err (!%p668_p2)
}
  0x20   : > { %s672_s20 = scalar_lea.vmem %s901_s5, 128  ;;  %s817_s21 = smov [#allocation5]  }
  0x21   : > { %p673_p3 = scmp.ne.s32.totalorder %s901_s5, %s672_s20  ;;  %s677_s23 = sshll.u32 %s817_s21, 4  ;;  %s678_s23 = int_to_ptr.vmem [resolvable:$false] %s677_s23 }
  0x22   : > { %s679_s24 = scalar_lea.vmem %s678_s23, 256  ;;  %p680_p8 = scmp.lt.s32.totalorder %s901_s5, %s678_s23 }
  0x23   : > { %p675_p4 = pnand %p673_p3, %p659_p7  ;;  %p681_p10 = scmp.lt.s32.totalorder %s679_s24, %s672_s20 }
  0x25   : > { %p676_p6 = pneg %p675_p4  ;;  %p682_p11 = por %p681_p10, %p680_p8 }
  0x27   : > { %p683_p12 = pnand %p682_p11, %p676_p6 }
  0x29   : > { %686 = shalt.err (!%p683_p12)
}
  0x2a   : > { %605 = dma.hbm_to_vmem [thread:$0]  (!%p897_p5), %s895_s29, 128, %s901_s5, %s905_s8  }
  0x2b   : > { %s938_s28 = scalar_lea.hbm %s1123_s3, %s499_s26  ;;  %s197_s30 = scalar_lea.vmem [#allocation7], %s903_s7 }
  0x2c   : > { %s203_s9 = sshll.u32 %s197_s30, 4  ;;  %s942_s10 = sadd.s32 4294967295, %s815_s18   ;;  %s968_s9 = int_to_ptr.vmem [resolvable:$true] %s203_s9 }
  0x2d   : > { %s494_s11 = sadd.s32 4294967294, %s815_s18   ;;  %p83_p9 = scmp.ne.s32.totalorder %s807_s16, %s803_s15 }
  0x2e   : > { %p1125_p13 = scmp.eq.s32.totalorder %s942_s10, 0  ;;  %p133_p1 = scmp.eq.s32.totalorder %s942_s10, 3 }
  0x2f   : > { %p139_p2 = scmp.eq.s32.totalorder %s494_s11, 3  ;;  %p495_p3 = scmp.ge.s32.totalorder %s815_s18, 1 }
  0x30   : > { %p952_p4 = por %p1125_p13, %p83_p9  ;;  %p959_p6 = por %p133_p1, %p77_p0 }
  0x31   : > { %p963_p8 = por %p139_p2, %p83_p9  ;;  %p146_p10 = scmp.lt.s32.totalorder %s815_s18, 5 }
  0x32   : > { %s1132_s26 = scalar_select %p952_p4, 1, 0 }
  0x33   : > { %s1133_s29 = scalar_select %p959_p6, 1, 0 }
  0x34   : > { %s1134_s5 = scalar_select %p963_p8, 1, 0 }
  0x35   : > { %p970_p11 = pnand %p495_p3, %p146_p10  ;;  %s818_s12 = smov [#allocation2]  }
  0x36   : > { %s158_s13 = sshll.u32 %s818_s12, 4  ;;  %s687_s20 = scalar_lea.hbm %s938_s28, 1792  ;;  %s976_s13 = int_to_ptr.vmem [resolvable:$true] %s158_s13 }
  0x37   : > { %s1135_s7 = scalar_select %p970_p11, 1, 0 }
  0x38   : > { %p598_p0 = pneg %p970_p11  ;;  %p688_p9 = scmp.ne.s32.totalorder %s938_s28, %s687_s20 }
  0x39   : > { %s692_s24 = scalar_lea.hbm %s1123_s3, 7168  ;;  %p693_p3 = scmp.lt.u32.totalorder %s938_s28, %s1123_s3 }
  0x3a   : > { %p980_p12 = pnand %p598_p0, %p1125_p13  ;;  %p690_p1 = pnand %p688_p9, %p659_p7 }
  0x3b   : > { %p694_p10 = scmp.lt.u32.totalorder %s692_s24, %s687_s20  ;;  %p696_p0 = scmp.lt.u32.totalorder %s687_s20, %s938_s28 }
  0x3c   : > { %p691_p2 = pneg %p690_p1 }
  0x3d   : > { %p695_p8 = por %p694_p10, %p693_p3 }
  0x3f   : > { %p697_p13 = por %p696_p0, %p695_p8 }
  0x41   : > { %p698_p6 = pnand %p697_p13, %p691_p2 }
  0x43   : > { %701 = shalt.err (!%p698_p6)
}
  0x44   : > { %s702_s30 = scalar_lea.vmem %s968_s9, 1792  ;;  %s819_s11 = smov [#allocation7]  }
  0x45   : > { %p703_p9 = scmp.ne.s32.totalorder %s968_s9, %s702_s30  ;;  %s707_s12 = sshll.u32 %s819_s11, 4  ;;  %s708_s12 = int_to_ptr.vmem [resolvable:$false] %s707_s12 }
  0x46   : > { %s709_s21 = scalar_lea.vmem %s708_s12, 3584  ;;  %p710_p11 = scmp.lt.s32.totalorder %s968_s9, %s708_s12 }
  0x47   : > { %p705_p1 = pnand %p703_p9, %p659_p7  ;;  %p711_p3 = scmp.lt.s32.totalorder %s709_s21, %s702_s30 }
  0x49   : > { %p706_p4 = pneg %p705_p1  ;;  %p712_p10 = por %p711_p3, %p710_p11 }
  0x4b   : > { %p713_p8 = pnand %p712_p10, %p706_p4 }
  0x4d   : > { %716 = shalt.err (!%p713_p8)
}
  0x4e   : > { %s820_s20 = smov 512   ;;  %s821_s23 = smov 128  }
  0x4f   : > { %s822_s24 = smov 8   ;;  %s717_s11 = scalar_lea.hbm %s1120_s0, 256 }
  0x50   : > { %608 = dma.hbm_to_vmem [thread:$0]  (!%p897_p5), %s938_s28, 1792, %s968_s9, %s905_s8, %s820_s20, %s821_s23, %s822_s24  }
  0x51   : > { %p718_p7 = scmp.ne.s32.totalorder %s1120_s0, %s717_s11  ;;  %p719_p13 = pneg %p980_p12 }
  0x52   : > { %p724_p11 = scmp.lt.u32.totalorder %s717_s11, %s1120_s0 }
  0x53   : > { %p720_p4 = pnand %p719_p13, %p718_p7 }
  0x55   : > { %p721_p6 = pneg %p720_p4 }
  0x57   : > { %p726_p2 = pnand %p724_p11, %p721_p6 }
  0x59   : > { %729 = shalt.err (!%p726_p2)
}
  0x5a   : > { %s730_s6 = scalar_lea.vmem %s976_s13, 256  ;;  %p738_p1 = scmp.lt.s32.totalorder %s976_s13, %s976_s13 }
  0x5b   : > { %p731_p5 = scmp.ne.s32.totalorder %s976_s13, %s730_s6  ;;  %p739_p3 = scmp.lt.s32.totalorder %s730_s6, %s730_s6 }
  0x5d   : > { %p733_p0 = pnand %p731_p5, %p719_p13  ;;  %p740_p10 = por %p739_p3, %p738_p1 }
  0x5f   : > { %p734_p9 = pneg %p733_p0 }
  0x61   : > { %p741_p8 = pnand %p740_p10, %p734_p9 }
  0x63   : > { %744 = shalt.err (!%p741_p8)
}
  0x64   : > { %601 = dma.hbm_to_vmem [thread:$0]  (!%p980_p12), %s1120_s0, 256, %s976_s13, [#allocation3], %s821_s23, %s821_s23, %s822_s24  }
  0x65   : > { %p1137_p7 = scmp.ne.s32.totalorder %s1135_s7, 0 }
  0x66   : > { %p1138_p4 = scmp.eq.s32.totalorder (!%p1137_p7), %s942_s10, 0 }
  0x67   : > { %215 = sbr.rel (%p1137_p7) target bundleno = 381 (0x17d), region = 36 }
  0x6e   : > { %790 = dma.done.wait (%p1138_p4), [#allocation3], 256   ;;  %p1139_p13 = pmov %p1138_p4 }
  0x6f   : > { %s221_s28 = sand.u32 1, %s942_s10   ;;  %s1037_s9 = sand.u32 1, %s807_s16  }
  0x70   : > { %792 = vsyncadd (%p1139_p13), [#allocation3], 4294967040  ;;  %s503_s14 = sshll.u32 %s1037_s9, 3  ;;  %s222_s20 = scalar_lea.sflag [#allocation6], %s221_s28 }
  0x71   : > { %s1042_s13 = scalar_lea.vmem [#allocation5], %s503_s14  ;;  %p1140_p12 = scmp.ne.s32.totalorder %s1132_s26, 0 }
  0x73   : > { %794 = dma.done.wait (%p1140_p12), %s222_s20, 1920  }
  0x74   : > { %796 = vsyncadd (%p1140_p12), %s222_s20, 4294965376  ;;  %s587_s7 = smul.u32 112, %s1037_s9  ;;  %v823_v0 = vmov 0   ;;  %vm280_vm0 = vcmask 916480   ;;  %v264_v9 = vld [vmem:[#allocation2] sm:$0xff]  ;;  %v824_v17 = vmov 1  }
  0x75   : > { %655 = vset.pattern.permute.xlu0 %v823_v0  ;;  %555 = vmatprep.mubr.msk.f32.mxu0 %vm280_vm0, %v264_v9  ;;  %v362_v11 = vld [vmem:[%s1121_s1] sm:$0xff]  ;;  %v265_v25 = vld [vmem:[#allocation2 + $0x8] sm:$0xff]  ;;  %v363_v27 = vld [vmem:[%s1042_s13] sm:$0xff]  ;;  %s508_s25 = sshll.u32 %s942_s10, 7  ;;  %s263_s27 = scalar_lea.vmem [#allocation8], %s503_s14 }
  0x76   : > { %s1049_s23 = scalar_lea.vmem [#allocation7], %s587_s7  ;;  %366 = vperm.xlu0 %655, %v362_v11   ;;  %s392_s11 = sshll.u32 %s263_s27, 4  ;;  %s1079_s11 = int_to_ptr.vmem [resolvable:$true] %s392_s11 }
  0x77   : > { %v266_v1 = vld [vmem:[%s1049_s23] sm:$0xff]  ;;  %v267_v2 = vld [vmem:[%s1049_s23 + $0x8] sm:$0xff]  ;;  %v268_v3 = vld [vmem:[%s1049_s23 + $0x10] sm:$0xff]  ;;  %s1077_s21 = scalar_lea.hbm %s1124_s4, %s508_s25  ;;  %s379_s6 = scalar_lea.sflag [#allocation4], %s1037_s9 }
  0x78   : > { %v558_v4 = vpack.c.bf16 %v267_v2, %v266_v1  ;;  %v269_v5 = vld [vmem:[%s1049_s23 + $0x18] sm:$0xff]  ;;  %v270_v7 = vld [vmem:[%s1049_s23 + $0x20] sm:$0xff]  ;;  %v271_v8 = vld [vmem:[%s1049_s23 + $0x28] sm:$0xff]  ;;  %s745_s2 = scalar_lea.vmem %s1079_s11, 128  ;;  %p1141_p11 = scmp.ne.s32.totalorder %s1133_s29, 0 }
  0x79   : > { %v562_v6 = vpack.c.bf16 %v269_v5, %v268_v3  ;;  %v566_v10 = vpack.c.bf16 %v271_v8, %v270_v7  ;;  %v272_v12 = vld [vmem:[%s1049_s23 + $0x30] sm:$0xff]  ;;  %v273_v13 = vld [vmem:[%s1049_s23 + $0x38] sm:$0xff]  ;;  %v274_v15 = vld [vmem:[%s1049_s23 + $0x40] sm:$0xff]  ;;  %p746_p6 = scmp.ne.s32.totalorder %s1079_s11, %s745_s2  ;;  %s825_s10 = smov [#allocation8]  }
  0x7a   : > { %559 = vmatprep.subr.bf16.mxu0 %v558_v4  ;;  %v570_v14 = vpack.c.bf16 %v273_v13, %v272_v12  ;;  %v275_v16 = vld [vmem:[%s1049_s23 + $0x48] sm:$0xff]  ;;  %656 = vset.pattern.permute.xlu0 %v824_v17  ;;  %v276_v19 = vld [vmem:[%s1049_s23 + $0x50] sm:$0xff]  ;;  %v277_v20 = vld [vmem:[%s1049_s23 + $0x58] sm:$0xff]  ;;  %s749_s8 = sshll.u32 %s825_s10, 4  ;;  %s750_s8 = int_to_ptr.vmem [resolvable:$false] %s749_s8 }
  0x7b   : > { %561 = vmatpush3.bf16.msra.mxu0 %v558_v4  ;;  %371 = vperm.xlu0 %656, %v362_v11   ;;  %v574_v18 = vpack.c.bf16 %v275_v16, %v274_v15  ;;  %v578_v21 = vpack.c.bf16 %v277_v20, %v276_v19  ;;  %v278_v22 = vld [vmem:[%s1049_s23 + $0x60] sm:$0xff]  ;;  %v279_v23 = vld [vmem:[%s1049_s23 + $0x68] sm:$0xff]  ;;  %p747_p2 = pnand %p746_p6, %p1141_p11  ;;  %s751_s28 = scalar_lea.vmem %s750_s8, 256 }
  0x7c   : > { %563 = vmatprep.subr.bf16.mxu0 %v562_v6  ;;  %v582_v24 = vpack.c.bf16 %v279_v23, %v278_v22  ;;  %p752_p0 = scmp.lt.s32.totalorder %s1079_s11, %s750_s8  ;;  %p753_p9 = scmp.lt.s32.totalorder %s751_s28, %s745_s2 }
  0x7d   : > { %p748_p5 = pneg %p747_p2 }
  0x7e   : > { %p754_p1 = por %p753_p9, %p752_p0 }
  0x7f   : > { %565 = vmatpush3.bf16.msra.mxu0 %v562_v6 }
  0x80   : > { %567 = vmatprep.subr.bf16.mxu0 %v566_v10  ;;  %p755_p3 = pnand %p754_p1, %p748_p5 }
  0x83   : > { %569 = vmatpush3.bf16.msra.mxu0 %v566_v10 }
  0x84   : > { %571 = vmatprep.subr.bf16.mxu0 %v570_v14 }
  0x87   : > { %573 = vmatpush3.bf16.msra.mxu0 %v570_v14 }
  0x88   : > { %575 = vmatprep.subr.bf16.mxu0 %v574_v18 }
  0x8b   : > { %577 = vmatpush3.bf16.msra.mxu0 %v574_v18 }
  0x8c   : > { %579 = vmatprep.subr.bf16.mxu0 %v578_v21 }
  0x8f   : > { %581 = vmatpush3.bf16.msra.mxu0 %v578_v21 }
  0x90   : > { %583 = vmatprep.subr.bf16.mxu0 %v582_v24 }
  0x93   : > { %585 = vmatpush3.bf16.msra.mxu0 %v582_v24 }
  0x96   : > { %556 = vmatmul.mubr.msk.f32.vlgmr.msra.gmra.mrb[0].mxu0 %vm280_vm0, %v265_v25 }
  0xf5   : > { %v367_v26 = vpop.permute.xlu0 %366 }
  0xf6   : > { %v369_v28 = vmul.f32 %v367_v26, %v363_v27 }
  0xfa   : > { %v372_v29 = vpop.permute.xlu0 %371 }
  0xfb   : > { %v374_v30 = vadd.f32 %v372_v29, %v369_v28 }
 0x169   : > { %v557_v31 = vpop.f32.mrb[0].mxu0 }
 0x16a   : > { %v353_v32 = vpop.f32.mrb[1].mxu0 }
 0x16b   : > { %v375_v33 = vmul.f32 %v374_v30, %v353_v32 }
 0x16d   : > { %v376_v34 = vadd.f32 %v557_v31, %v375_v33 }
 0x16f   : > { %377 = vst [vmem:[%s263_s27] sm:$0xff] %v376_v34 }
 0x170   : > { %758 = shalt.err (!%p755_p3)
}
 0x171   : > { %s759_s9 = scalar_lea.hbm %s1077_s21, 128  ;;  %s763_s13 = scalar_lea.hbm %s1124_s4, 512 }
 0x172   : > { %p760_p10 = scmp.ne.s32.totalorder %s1077_s21, %s759_s9  ;;  %p764_p4 = scmp.lt.u32.totalorder %s1077_s21, %s1124_s4 }
 0x173   : > { %p765_p13 = scmp.lt.u32.totalorder %s763_s13, %s759_s9  ;;  %p767_p6 = scmp.lt.u32.totalorder %s759_s9, %s1077_s21 }
 0x174   : > { %p761_p8 = pnand %p760_p10, %p1141_p11 }
 0x175   : > { %p766_p12 = por %p765_p13, %p764_p4 }
 0x176   : > { %p762_p7 = pneg %p761_p8 }
 0x177   : > { %p768_p2 = por %p767_p6, %p766_p12 }
 0x179   : > { %p769_p5 = pnand %p768_p2, %p762_p7 }
 0x17b   : > { %772 = shalt.err (!%p769_p5)
}
 0x17c   : > { %596 = dma.vmem_to_hbm [thread:$0]  (%p1141_p11), %s1079_s11, 128, %s1077_s21, %s379_s6  }
 0x17d PF: > { %p616_p0 = scmp.ge.s32.totalorder %s815_s18, 2  ;;  %s404_s26 = sand.u32 1, %s803_s15  }
 0x17e   : > { %p1142_p9 = scmp.ne.s32.totalorder %s1134_s5, 0  ;;  %s405_s24 = scalar_lea.sflag [#allocation4], %s404_s26 }
 0x180   : > { %p610_p1 = pnand %p616_p0, %p1142_p9 }
 0x182   : > { %798 = dma.done.wait (!%p610_p1), %s405_s24, 128  }
 0x183   : > { %800 = vsyncadd (!%p610_p1), %s405_s24, 4294967168  ;;  %p18_p3 = scmp.ge.s32.totalorder %s872_s19, 6   ;;  %s1143_s15 = smov %s807_s16 }
 0x184   : > { %s1144_s16 = smov %s811_s17  ;;  %s1145_s17 = smov %s882_s22 }
 0x185   : > { %s1146_s18 = smov %s872_s19  ;;  %20 = sbr.rel (!%p18_p3) target bundleno = 8 (0x8), region = 97 }
 0x18c   :  { %410 = vsyncpa [#allocation3], 1 }
 0x18d   :  { %412 = vsyncpa [#allocation3 + $0x1], 1 }
 0x18e   :  { %413 = vsyncpa [#allocation6], 1 }
 0x18f   :  { %415 = vsyncpa [#allocation6 + $0x1], 1 }
 0x190   :  { %416 = vsyncpa [#allocation4], 1 }
 0x191   :  { %418 = vsyncpa [#allocation4 + $0x1], 1 }

</bundles_post_ra>
